<compile_context>
chip_gen: v5e
topology: v5e:2x2
jax: 0.10.0
libtpu: 0.0.40
codegen_flags: <defaults>
</compile_context>

<pallas_src>
import functools

import jax
import jax.numpy as jnp
from jax import lax
from jax.experimental import pallas as pl
from jax.experimental.pallas import tpu as pltpu

_LANE = 128


def _ar_block_kernel(trip_ref, vl_ref, inv_den_ref, wenc_ref, wx_ref,
                     wh_ref, b_ref, loss_ref):
    """One B-block; all encoder/decoder pairs; one scalar loss tile out.

    trip_ref    : (bb, T, D)   f32   (block of the batch)
    vl_ref      : (bb, 1, 1)   i32
    inv_den_ref : (1, 1)       f32   SMEM (global 1/denominator, exact)
    wenc_ref    : (D, P*HP)    bf16  (pairs stacked, 128-lane aligned stride)
    wx_ref      : (D, P*DP)    bf16  (pairs stacked, 128-lane aligned stride)
    wh_ref      : (P, HP, D)   bf16  (H padded to HP with zeros)
    b_ref       : (P, 1, D)    f32
    loss_ref    : (1, 8, 128)  f32   (block loss broadcast across the tile)
    """
    trip = trip_ref[...]                               # (bb, T, D) f32
    vl = vl_ref[...].reshape(vl_ref.shape[0], 1)       # (bb, 1) i32
    bb, T, D = trip.shape
    P, HP, _ = wh_ref.shape
    DP = wx_ref.shape[1] // P

    # -------- masks (per block; denominator is global and comes from SMEM) --
    t_idx = lax.broadcasted_iota(jnp.int32, (bb, T), 1)           # (bb, T)
    valid_mask = (t_idx < vl).astype(jnp.float32)                 # (bb, T)
    next_mask = (t_idx < (vl - 1)).astype(jnp.float32)            # (bb, T)
    inv_len = pl.reciprocal(jnp.maximum(vl.astype(jnp.float32), 1.0),
                            approx=True)                          # EUP slot

    # -------- shifted target built in-kernel (no second HBM stream) ---------
    # label[t] = trip[t+1]; the wrapped row t = T-1 is always masked because
    # valid_len <= T  =>  next_mask[:, T-1] == 0.
    label = pltpu.roll(trip, shift=T - 1, axis=1)                 # (bb, T, D)

    # -------- encoder: pool over time BEFORE the matmul ----------------------
    pooled = jnp.sum(trip * valid_mask[:, :, None], axis=1) * inv_len   # (bb, D)
    encode_all = jnp.dot(pooled.astype(jnp.bfloat16), wenc_ref[...],
                         preferred_element_type=jnp.float32)            # (bb, P*HP)

    # -------- decoder input projection for ALL pairs in one 2-D matmul ------
    x2d = trip.reshape(bb * T, D).astype(jnp.bfloat16)                  # (bb*T, D)
    predx_all = jnp.dot(x2d, wx_ref[...],
                        preferred_element_type=jnp.float32)             # (bb*T, P*DP)

    nmask3 = next_mask[:, :, None]                                      # (bb, T, 1)
    inv_den = inv_den_ref[0, 0]                                         # f32 scalar

    # P is small and static -> unrolled at trace time; accumulation is a
    # single f32 scalar so only one pair's (bb,T,D) temporaries are hot.
    # TODO(synk): for large P, move pairs to an "arbitrary" grid axis (or
    # lax.fori_loop) to bound live ranges instead of static unrolling.
    total = jnp.float32(0.0)
    for p in range(P):
        enc_p = encode_all[:, p * HP:(p + 1) * HP].astype(jnp.bfloat16)  # aligned view
        predh_p = jnp.dot(enc_p, wh_ref[p],
                          preferred_element_type=jnp.float32)            # (bb, D)
        predx_p = predx_all[:, p * DP:p * DP + D].reshape(bb, T, D)      # aligned start
        pred_p = predx_p + predh_p[:, None, :] + b_ref[p][None, :, :]    # (bb, T, D) f32
        diff = pred_p - label
        total = total + jnp.sum(diff * diff * nmask3)                    # f32 scalar

    # Lane-dense broadcast store of the block's normalized loss.
    loss_ref[...] = jnp.full(loss_ref.shape, total * inv_den, dtype=jnp.float32)


def auto_regressive_paired_loss(trip, valid_len, w_enc, w_dec_x, w_dec_h,
                                b_dec, *, block_b=None):
    """Sum of per-pair decoder losses (paired=True branch of AutoRegressive)."""
    B, T, D = trip.shape
    P, _, H = w_enc.shape

    # Lane-aligned pair stride: pad each pair's output columns to 128 lanes so
    # in-kernel per-pair slices are aligned views (no relayout copies).  At
    # production sizes (D, H multiples of 128) the padding is a no-op.
    HP = -(-H // _LANE) * _LANE
    DP = -(-D // _LANE) * _LANE

    w_enc_all = jnp.pad(w_enc, ((0, 0), (0, 0), (0, HP - H)))            # (P, D, HP)
    w_enc_all = jnp.transpose(w_enc_all, (1, 0, 2)).reshape(D, P * HP)
    w_enc_all = w_enc_all.astype(jnp.bfloat16)

    w_x_all = jnp.pad(w_dec_x, ((0, 0), (0, 0), (0, DP - D)))            # (P, D, DP)
    w_x_all = jnp.transpose(w_x_all, (1, 0, 2)).reshape(D, P * DP)
    w_x_all = w_x_all.astype(jnp.bfloat16)

    w_h_all = jnp.pad(w_dec_h, ((0, 0), (0, HP - H), (0, 0))).astype(jnp.bfloat16)

    vl = valid_len.astype(jnp.int32)
    vl3 = vl.reshape(B, 1, 1)

    # Global denominator (exact, computed once in XLA):
    #   den = max(D * sum_b max(vl_b - 1, 0), 1)
    # Passed as an SMEM scalar so every B-block normalizes by the SAME global
    # count (correct under tiling).
    cnt = jnp.sum(jnp.maximum(vl - 1, 0)).astype(jnp.float32)
    inv_den = (1.0 / jnp.maximum(cnt * jnp.float32(D), 1.0)).reshape(1, 1)

    # Largest B-block that keeps the trip stream comfortably inside the scoped
    # VMEM budget (double-buffered); grid steps cost ~0.35us each on a single
    # TC, so only tile when residency demands it.  Kept a divisor of B so
    # every block is full (padded blocks would feed garbage valid_len rows).
    if block_b is None:
        budget_bytes = 4 * 1024 * 1024                 # one trip block, f32
        block_b = max(1, budget_bytes // max(1, T * D * 4))
    block_b = int(max(1, min(block_b, B)))
    while B % block_b:
        block_b -= 1
    nb = B // block_b
    # TODO(synk): for non-divisible production B, pad the batch in the wrapper
    # (masked rows contribute 0) instead of shrinking block_b.

    flops = (2 * B * D * (P * HP)            # encoder projection
             + 2 * B * T * D * (P * DP)      # decoder input projection
             + 2 * B * HP * D * P            # decoder hidden projection
             + 10 * B * T * D * P)           # elementwise loss math
    bytes_accessed = (4 * B * T * D + 4 * B
                      + 2 * (D * P * HP + D * P * DP + P * HP * D)
                      + 4 * P * D + 4 * nb * 8 * 128)
    cost = pl.CostEstimate(flops=int(flops), transcendentals=int(B),
                           bytes_accessed=int(bytes_accessed))

    partial = pl.pallas_call(
        _ar_block_kernel,
        out_shape=jax.ShapeDtypeStruct((nb, 8, 128), jnp.float32),
        grid=(nb,),
        in_specs=[
            pl.BlockSpec((block_b, T, D), lambda b: (b, 0, 0)),    # trip block
            pl.BlockSpec((block_b, 1, 1), lambda b: (b, 0, 0)),    # valid_len block
            pl.BlockSpec(memory_space=pltpu.MemorySpace.SMEM),     # inv_den scalar
            pl.BlockSpec((D, P * HP), lambda b: (0, 0)),           # w_enc (resident)
            pl.BlockSpec((D, P * DP), lambda b: (0, 0)),           # w_dec_x (resident)
            pl.BlockSpec((P, HP, D), lambda b: (0, 0, 0)),         # w_dec_h (resident)
            pl.BlockSpec((P, 1, D), lambda b: (0, 0, 0)),          # b_dec (resident)
        ],
        out_specs=pl.BlockSpec((1, 8, 128), lambda b: (b, 0, 0)),
        compiler_params=pltpu.CompilerParams(
            dimension_semantics=("parallel",),
            vmem_limit_bytes=32 * 1024 * 1024),
        cost_estimate=cost,
    )(trip, vl3, inv_den, w_enc_all, w_x_all, w_h_all, b_dec)

    # One scalar per block (broadcast tile) -> tiny XLA reduction over blocks.
    # TODO(synk): paired=False branch (concat encoder outputs, one decoder)
    # not implemented; same math with W_dec_h of shape (num_encoders*H, D).
    return jnp.sum(partial[:, 0, 0])


def _reference_loss(trip, valid_len, w_enc, w_dec_x, w_dec_h, b_dec):
    """Pure-JAX f32 reference mirroring the kernel semantics."""
    B, T, D = trip.shape
    P = w_enc.shape[0]
    t_idx = jnp.arange(T)[None, :]
    vl = valid_len.astype(jnp.int32)[:, None]
    valid_mask = (t_idx < vl).astype(jnp.float32)
    next_mask = (t_idx[:, : T - 1] < (vl - 1)).astype(jnp.float32)
    total = 0.0
    for p in range(P):
        h = jnp.einsum("btd,dh->bth", trip, w_enc[p])
        enc = jnp.sum(h * valid_mask[:, :, None], axis=1) / jnp.maximum(
            vl.astype(jnp.float32), 1.0)
        pred = (jnp.einsum("btd,de->bte", trip, w_dec_x[p])
                + (enc @ w_dec_h[p])[:, None, :] + b_dec[p][None, :, :])
        sq = (pred[:, : T - 1, :] - trip[:, 1:, :]) ** 2
        num = jnp.sum(sq * next_mask[:, :, None])
        den = jnp.maximum(jnp.sum(next_mask) * D, 1.0)
        total = total + num / den
    return total


if __name__ == "__main__":
    # Small shapes: batch=2, seq=8, feature=4, hidden=32, 2 encoder/decoder pairs
    B, T, D, H, P = 2, 8, 4, 32, 2

    key = jax.random.PRNGKey(0)
    k_trip, k_we, k_wx, k_wh, k_b = jax.random.split(key, 5)

    trip = jax.random.normal(k_trip, (B, T, D), dtype=jnp.float32)
    valid_len = jnp.array([8, 5], dtype=jnp.int32)          # per-sequence lengths

    w_enc = 0.1 * jax.random.normal(k_we, (P, D, H), dtype=jnp.float32)
    w_dec_x = 0.1 * jax.random.normal(k_wx, (P, D, D), dtype=jnp.float32)
    w_dec_h = 0.1 * jax.random.normal(k_wh, (P, H, D), dtype=jnp.float32)
    b_dec = 0.1 * jax.random.normal(k_b, (P, 1, D), dtype=jnp.float32)

    loss_fn = jax.jit(
        functools.partial(auto_regressive_paired_loss, block_b=1))  # 2-step parallel grid
    loss = loss_fn(trip, valid_len, w_enc, w_dec_x, w_dec_h, b_dec)
    loss = jax.block_until_ready(loss)

    ref = _reference_loss(trip, valid_len, w_enc, w_dec_x, w_dec_h, b_dec)
    # bf16 matmul operands (f32 accumulation) + approx reciprocal on the
    # pooling length -> slightly looser tolerance than a pure-f32 comparison.
    assert jnp.allclose(loss, ref, rtol=2e-2, atol=2e-2), (loss, ref)

    print("KERNEL_OK")
</pallas_src>

<mosaic_0001>
module attributes {stable_mosaic.version = 11 : i64} {
  func.func @_ar_block_kernel(%arg0: i32, %arg1: memref<1x8x4xf32, #tpu.memory_space<vmem>>, %arg2: memref<1x1x1xi32, #tpu.memory_space<vmem>>, %arg3: memref<1x1xf32, #tpu.memory_space<smem>>, %arg4: memref<4x256xbf16, #tpu.memory_space<vmem>>, %arg5: memref<4x256xbf16, #tpu.memory_space<vmem>>, %arg6: memref<2x128x4xbf16, #tpu.memory_space<vmem>>, %arg7: memref<2x1x4xf32, #tpu.memory_space<vmem>>, %arg8: memref<1x8x128xf32, #tpu.memory_space<vmem>>) attributes {dimension_semantics = [#tpu.dimension_semantics<parallel>], iteration_bounds = array<i64: 2>, scalar_prefetch = 0 : i64, scratch_operands = 0 : i64, tpu.core_type = #tpu.core_type<tc>, window_params = [{transform_indices = @transform_0, window_bounds = array<i64: 1, 8, 4>}, {transform_indices = @transform_1, window_bounds = array<i64: 1, 1, 1>}, {transform_indices = @transform_2, window_bounds = array<i64: 1, 1>}, {pipeline_mode = #tpu.pipeline_mode<synchronous>, transform_indices = @transform_3, window_bounds = array<i64: 4, 256>}, {pipeline_mode = #tpu.pipeline_mode<synchronous>, transform_indices = @transform_4, window_bounds = array<i64: 4, 256>}, {pipeline_mode = #tpu.pipeline_mode<synchronous>, transform_indices = @transform_5, window_bounds = array<i64: 2, 128, 4>}, {pipeline_mode = #tpu.pipeline_mode<synchronous>, transform_indices = @transform_6, window_bounds = array<i64: 2, 1, 4>}, {transform_indices = @transform_7, window_bounds = array<i64: 1, 8, 128>}]} {
    %c0 = arith.constant 0 : index
    %c0_0 = arith.constant 0 : index
    %c0_1 = arith.constant 0 : index
    %0 = vector.load %arg1[%c0, %c0_0, %c0_1] : memref<1x8x4xf32, #tpu.memory_space<vmem>>, vector<1x8x4xf32>
    %c0_2 = arith.constant 0 : index
    %c0_3 = arith.constant 0 : index
    %c0_4 = arith.constant 0 : index
    %1 = vector.load %arg2[%c0_2, %c0_3, %c0_4] : memref<1x1x1xi32, #tpu.memory_space<vmem>>, vector<1x1x1xi32>
    %2 = vector.shape_cast %1 : vector<1x1x1xi32> to vector<1x1xi32>
    %3 = tpu.iota {dimensions = array<i32: 1>} : vector<1x8xi32>
    %4 = vector.broadcast %2 : vector<1x1xi32> to vector<1x8xi32>
    %5 = arith.cmpi slt, %3, %4 : vector<1x8xi32>
    %6 = arith.extui %5 : vector<1x8xi1> to vector<1x8xi32>
    %7 = arith.sitofp %6 : vector<1x8xi32> to vector<1x8xf32>
    %c1_i32 = arith.constant 1 : i32
    %8 = vector.broadcast %c1_i32 : i32 to vector<1x1xi32>
    %9 = arith.subi %2, %8 : vector<1x1xi32>
    %10 = vector.broadcast %9 : vector<1x1xi32> to vector<1x8xi32>
    %11 = arith.cmpi slt, %3, %10 : vector<1x8xi32>
    %12 = arith.extui %11 : vector<1x8xi1> to vector<1x8xi32>
    %13 = arith.sitofp %12 : vector<1x8xi32> to vector<1x8xf32>
    %14 = arith.sitofp %2 : vector<1x1xi32> to vector<1x1xf32>
    %cst = arith.constant 1.000000e+00 : f32
    %15 = vector.broadcast %cst : f32 to vector<1x1xf32>
    %16 = arith.maximumf %14, %15 : vector<1x1xf32>
    %17 = tpu.reciprocal %16 {approx = true} : vector<1x1xf32> -> vector<1x1xf32>
    %c7_i32 = arith.constant 7 : i32
    %18 = tpu.dynamic_rotate %0 by %c7_i32 dim 1 : vector<1x8x4xf32>, i32 -> vector<1x8x4xf32>
    %19 = vector.shape_cast %7 : vector<1x8xf32> to vector<1x8x1xf32>
    %20 = vector.broadcast %19 : vector<1x8x1xf32> to vector<1x8x4xf32>
    %21 = arith.mulf %0, %20 : vector<1x8x4xf32>
    %cst_5 = arith.constant dense<0.000000e+00> : vector<1x4xf32>
    %22 = vector.multi_reduction <add>, %21, %cst_5 [1] : vector<1x8x4xf32> to vector<1x4xf32>
    %23 = vector.broadcast %17 : vector<1x1xf32> to vector<1x4xf32>
    %24 = arith.mulf %22, %23 : vector<1x4xf32>
    %25 = arith.truncf %24 : vector<1x4xf32> to vector<1x4xbf16>
    %c0_6 = arith.constant 0 : index
    %c0_7 = arith.constant 0 : index
    %26 = vector.load %arg4[%c0_6, %c0_7] : memref<4x256xbf16, #tpu.memory_space<vmem>>, vector<4x256xbf16>
    %cst_8 = arith.constant dense<0.000000e+00> : vector<1x256xf32>
    %27 = tpu.matmul %25, %26, %cst_8 {dimension_numbers = #tpu.dot_dimension_numbers<[1], [0], [0], [1], [0, 0, 1, 1], [], []>} : vector<1x4xbf16>, vector<4x256xbf16>, vector<1x256xf32> -> vector<1x256xf32>
    %28 = vector.shape_cast %0 : vector<1x8x4xf32> to vector<8x4xf32>
    %29 = arith.truncf %28 : vector<8x4xf32> to vector<8x4xbf16>
    %c0_9 = arith.constant 0 : index
    %c0_10 = arith.constant 0 : index
    %30 = vector.load %arg5[%c0_9, %c0_10] : memref<4x256xbf16, #tpu.memory_space<vmem>>, vector<4x256xbf16>
    %cst_11 = arith.constant dense<0.000000e+00> : vector<8x256xf32>
    %31 = tpu.matmul %29, %30, %cst_11 {dimension_numbers = #tpu.dot_dimension_numbers<[1], [0], [0], [1], [0, 0, 1, 1], [], []>} : vector<8x4xbf16>, vector<4x256xbf16>, vector<8x256xf32> -> vector<8x256xf32>
    %32 = vector.shape_cast %13 : vector<1x8xf32> to vector<1x8x1xf32>
    %c0_12 = arith.constant 0 : index
    %c0_13 = arith.constant 0 : index
    %33 = memref.load %arg3[%c0_12, %c0_13] : memref<1x1xf32, #tpu.memory_space<smem>>
    %34 = vector.extract_strided_slice %27 {offsets = [0, 0], sizes = [1, 128], strides = [1, 1]} : vector<1x256xf32> to vector<1x128xf32>
    %35 = arith.truncf %34 : vector<1x128xf32> to vector<1x128xbf16>
    %c0_14 = arith.constant 0 : index
    %c0_15 = arith.constant 0 : index
    %c0_16 = arith.constant 0 : index
    %36 = vector.load %arg6[%c0_14, %c0_15, %c0_16] : memref<2x128x4xbf16, #tpu.memory_space<vmem>>, vector<1x128x4xbf16>
    %37 = vector.shape_cast %36 : vector<1x128x4xbf16> to vector<128x4xbf16>
    %cst_17 = arith.constant dense<0.000000e+00> : vector<1x4xf32>
    %38 = tpu.matmul %35, %37, %cst_17 {dimension_numbers = #tpu.dot_dimension_numbers<[1], [0], [0], [1], [0, 0, 1, 1], [], []>} : vector<1x128xbf16>, vector<128x4xbf16>, vector<1x4xf32> -> vector<1x4xf32>
    %39 = vector.extract_strided_slice %31 {offsets = [0, 0], sizes = [8, 4], strides = [1, 1]} : vector<8x256xf32> to vector<8x4xf32>
    %40 = vector.shape_cast %39 : vector<8x4xf32> to vector<1x8x4xf32>
    %41 = vector.shape_cast %38 : vector<1x4xf32> to vector<1x1x4xf32>
    %42 = vector.broadcast %41 : vector<1x1x4xf32> to vector<1x8x4xf32>
    %43 = arith.addf %40, %42 : vector<1x8x4xf32>
    %c0_18 = arith.constant 0 : index
    %c0_19 = arith.constant 0 : index
    %c0_20 = arith.constant 0 : index
    %44 = vector.load %arg7[%c0_18, %c0_19, %c0_20] : memref<2x1x4xf32, #tpu.memory_space<vmem>>, vector<1x1x4xf32>
    %45 = vector.shape_cast %44 : vector<1x1x4xf32> to vector<1x4xf32>
    %46 = vector.shape_cast %45 : vector<1x4xf32> to vector<1x1x4xf32>
    %47 = vector.broadcast %46 : vector<1x1x4xf32> to vector<1x8x4xf32>
    %48 = arith.addf %43, %47 : vector<1x8x4xf32>
    %49 = arith.subf %48, %18 : vector<1x8x4xf32>
    %50 = arith.mulf %49, %49 : vector<1x8x4xf32>
    %51 = vector.broadcast %32 : vector<1x8x1xf32> to vector<1x8x4xf32>
    %52 = arith.mulf %50, %51 : vector<1x8x4xf32>
    %53 = vector.shape_cast %52 : vector<1x8x4xf32> to vector<1x1x8x4xf32>
    %cst_21 = arith.constant dense<0.000000e+00> : vector<1xf32>
    %54 = vector.multi_reduction <add>, %53, %cst_21 [1, 2, 3] : vector<1x1x8x4xf32> to vector<1xf32>
    %55 = vector.shape_cast %54 : vector<1xf32> to vector<1x1x1x1xf32>
    %56 = vector.extract %55[0, 0, 0, 0] : f32 from vector<1x1x1x1xf32>
    %cst_22 = arith.constant 0.000000e+00 : f32
    %57 = arith.addf %cst_22, %56 : f32
    %58 = vector.extract_strided_slice %27 {offsets = [0, 128], sizes = [1, 128], strides = [1, 1]} : vector<1x256xf32> to vector<1x128xf32>
    %59 = arith.truncf %58 : vector<1x128xf32> to vector<1x128xbf16>
    %c1 = arith.constant 1 : index
    %c0_23 = arith.constant 0 : index
    %c0_24 = arith.constant 0 : index
    %60 = vector.load %arg6[%c1, %c0_23, %c0_24] : memref<2x128x4xbf16, #tpu.memory_space<vmem>>, vector<1x128x4xbf16>
    %61 = vector.shape_cast %60 : vector<1x128x4xbf16> to vector<128x4xbf16>
    %cst_25 = arith.constant dense<0.000000e+00> : vector<1x4xf32>
    %62 = tpu.matmul %59, %61, %cst_25 {dimension_numbers = #tpu.dot_dimension_numbers<[1], [0], [0], [1], [0, 0, 1, 1], [], []>} : vector<1x128xbf16>, vector<128x4xbf16>, vector<1x4xf32> -> vector<1x4xf32>
    %63 = vector.extract_strided_slice %31 {offsets = [0, 128], sizes = [8, 4], strides = [1, 1]} : vector<8x256xf32> to vector<8x4xf32>
    %64 = vector.shape_cast %63 : vector<8x4xf32> to vector<1x8x4xf32>
    %65 = vector.shape_cast %62 : vector<1x4xf32> to vector<1x1x4xf32>
    %66 = vector.broadcast %65 : vector<1x1x4xf32> to vector<1x8x4xf32>
    %67 = arith.addf %64, %66 : vector<1x8x4xf32>
    %c1_26 = arith.constant 1 : index
    %c0_27 = arith.constant 0 : index
    %c0_28 = arith.constant 0 : index
    %68 = vector.load %arg7[%c1_26, %c0_27, %c0_28] : memref<2x1x4xf32, #tpu.memory_space<vmem>>, vector<1x1x4xf32>
    %69 = vector.shape_cast %68 : vector<1x1x4xf32> to vector<1x4xf32>
    %70 = vector.shape_cast %69 : vector<1x4xf32> to vector<1x1x4xf32>
    %71 = vector.broadcast %70 : vector<1x1x4xf32> to vector<1x8x4xf32>
    %72 = arith.addf %67, %71 : vector<1x8x4xf32>
    %73 = arith.subf %72, %18 : vector<1x8x4xf32>
    %74 = arith.mulf %73, %73 : vector<1x8x4xf32>
    %75 = vector.broadcast %32 : vector<1x8x1xf32> to vector<1x8x4xf32>
    %76 = arith.mulf %74, %75 : vector<1x8x4xf32>
    %77 = vector.shape_cast %76 : vector<1x8x4xf32> to vector<1x1x8x4xf32>
    %cst_29 = arith.constant dense<0.000000e+00> : vector<1xf32>
    %78 = vector.multi_reduction <add>, %77, %cst_29 [1, 2, 3] : vector<1x1x8x4xf32> to vector<1xf32>
    %79 = vector.shape_cast %78 : vector<1xf32> to vector<1x1x1x1xf32>
    %80 = vector.extract %79[0, 0, 0, 0] : f32 from vector<1x1x1x1xf32>
    %81 = arith.addf %57, %80 : f32
    %82 = arith.mulf %81, %33 : f32
    %83 = vector.broadcast %82 : f32 to vector<1x8x128xf32>
    %c0_30 = arith.constant 0 : index
    %c0_31 = arith.constant 0 : index
    %c0_32 = arith.constant 0 : index
    %84 = vector.load %arg8[%c0_30, %c0_31, %c0_32] : memref<1x8x128xf32, #tpu.memory_space<vmem>>, vector<1x8x128xf32>
    tpu.vector_store %arg8[%c0_30, %c0_31, %c0_32], %83 {strides = array<i32>} : memref<1x8x128xf32, #tpu.memory_space<vmem>>, vector<1x8x128xf32>,
    return
  }
  func.func @transform_0(%arg0: i32) -> (i32, i32, i32) {
    %c0_i32 = arith.constant 0 : i32
    %c0_i32_0 = arith.constant 0 : i32
    %c0_i32_1 = arith.constant 0 : i32
    return %arg0, %c0_i32, %c0_i32_0 : i32, i32, i32
  }
  func.func @transform_1(%arg0: i32) -> (i32, i32, i32) {
    %c0_i32 = arith.constant 0 : i32
    %c0_i32_0 = arith.constant 0 : i32
    %c0_i32_1 = arith.constant 0 : i32
    return %arg0, %c0_i32, %c0_i32_0 : i32, i32, i32
  }
  func.func @transform_2(%arg0: i32) -> (i32, i32) {
    %c0_i32 = arith.constant 0 : i32
    %c0_i32_0 = arith.constant 0 : i32
    %c0_i32_1 = arith.constant 0 : i32
    return %c0_i32, %c0_i32_0 : i32, i32
  }
  func.func @transform_3(%arg0: i32) -> (i32, i32) {
    %c0_i32 = arith.constant 0 : i32
    %c0_i32_0 = arith.constant 0 : i32
    %c0_i32_1 = arith.constant 0 : i32
    return %c0_i32, %c0_i32_0 : i32, i32
  }
  func.func @transform_4(%arg0: i32) -> (i32, i32) {
    %c0_i32 = arith.constant 0 : i32
    %c0_i32_0 = arith.constant 0 : i32
    %c0_i32_1 = arith.constant 0 : i32
    return %c0_i32, %c0_i32_0 : i32, i32
  }
  func.func @transform_5(%arg0: i32) -> (i32, i32, i32) {
    %c0_i32 = arith.constant 0 : i32
    %c0_i32_0 = arith.constant 0 : i32
    %c0_i32_1 = arith.constant 0 : i32
    %c0_i32_2 = arith.constant 0 : i32
    return %c0_i32, %c0_i32_0, %c0_i32_1 : i32, i32, i32
  }
  func.func @transform_6(%arg0: i32) -> (i32, i32, i32) {
    %c0_i32 = arith.constant 0 : i32
    %c0_i32_0 = arith.constant 0 : i32
    %c0_i32_1 = arith.constant 0 : i32
    %c0_i32_2 = arith.constant 0 : i32
    return %c0_i32, %c0_i32_0, %c0_i32_1 : i32, i32, i32
  }
  func.func @transform_7(%arg0: i32) -> (i32, i32, i32) {
    %c0_i32 = arith.constant 0 : i32
    %c0_i32_0 = arith.constant 0 : i32
    %c0_i32_1 = arith.constant 0 : i32
    return %arg0, %c0_i32, %c0_i32_0 : i32, i32, i32
  }
}

</mosaic_0001>

<bundles_post_ra>
// kernel: auto_regressive_paired_loss.1
= control target key start
LH: loop header
LB: loop body
LE: loop exit
PB: predicated region body
PF: predicated region fallthrough
CT: control target
= control target key end

     0   :  { %s874_s26 = smov 0   ;;  %s979_s0 = inlined_call_operand.vmem [shape: f32[2,8,4], index: 0, kind: input, shape index: {}]   ;;  %s980_s1 = inlined_call_operand.vmem [shape: s32[2,1,1], index: 1, kind: input, shape index: {}]   ;;  %s981_s2 = inlined_call_operand.<no memory space> [shape: f32[1,1], index: 2, kind: input, shape index: {}]   ;;  %s982_s3 = inlined_call_operand.vmem [shape: bf16[4,256], index: 3, kind: input, shape index: {}]   ;;  %s983_s4 = inlined_call_operand.vmem [shape: bf16[4,256], index: 4, kind: input, shape index: {}]   ;;  %s984_s5 = inlined_call_operand.vmem [shape: bf16[2,128,4], index: 5, kind: input, shape index: {}]   ;;  %s985_s6 = inlined_call_operand.vmem [shape: f32[2,1,4], index: 6, kind: input, shape index: {}]   ;;  %s986_s7 = inlined_call_operand.vmem [shape: f32[2,8,128], index: 7, kind: output, shape index: {}]  }
   0x1   :  { %12 = sst [smem:[#allocation2]] %s981_s2 }
   0x2 LB: > { %s686_s27 = sadd.s32 4294967295, %s827_s26   ;;  %p690_p0 = scmp.ge.s32.totalorder %s827_s26, 1  ;;  %s827_s26 = sphi %s874_s26, %s18_s26  }
   0x3   : > { %p245_p1 = scmp.lt.s32.totalorder %s827_s26, 3 }
   0x5   : > { %p246_p2 = pnand %p690_p0, %p245_p1 }
   0x6   : > { %p278_p3 = scmp.lt.s32.totalorder (!%p246_p2), %s686_s27, 1  ;;  %s420_s8 = sld [smem:[#allocation2]] (!%p246_p2) }
   0x7   : > { %249 = sbr.rel (%p246_p2) target bundleno = 726 (0x2d6), region = 48 }
   0xc   : > { %v292_v0 = vlaneseq  ;;  %v829_v1 = vmov 0   ;;  %s988_s27 = smov (!%p278_p3, %s686_s27), 1  ;;  %v830_v11 = vmov 0.0   ;;  %v336_v14 = vld [vmem:[%s982_s3] sm:$0xf]  ;;  %vm344_vm1 = vcmask 1041408  }
   0xd   : > { %813 = vset.pattern.permute.xlu0 %v829_v1  ;;  %815 = vset.pattern.permute.xlu1 %v829_v1  ;;  %s284_s29 = scalar_lea.vmem %s980_s1, %s988_s27  ;;  %338 = vst [vmem:[#allocation1] ss:$4 sm:$0xff] %v336_v14  ;;  %v376_v22 = vld [vmem:[%s983_s4] sm:$0xf]  ;;  %s691_s11 = sshll.u32 %s988_s27, 3  ;;  %vm320_vm3 = vcmask 31744  }
   0xe   : > { %v314_v2 = vshrl.u32 %v292_v0, 7  ;;  %v291_v3 = vld [vmem:[%s284_s29] sm:$0x1]  ;;  %v293_v8 = vand.u32 127, %v292_v0  ;;  %s281_s14 = scalar_lea.vmem %s979_s0, %s691_s11  ;;  %v790_v36 = vld [vmem:[%s984_s5 + $0x38] sm:$0xff]  ;;  %v789_v38 = vld [vmem:[%s984_s5 + $0x30] sm:$0xff]  ;;  %s288_s15 = scalar_lea.vmem %s986_s7, %s691_s11 }
   0xf   : > { %295 = vperm.xlu0 %813, %v291_v3   ;;  %v309_v4 = vcvt.s32.f32 %v291_v3  ;;  %v694_v7 = vadd.s32 4294967295, %v291_v3  ;;  %v902_v23 = vld [vmem:[%s281_s14] sm:$0xff]  ;;  %v798_v37 = vld [vmem:[%s984_s5 + $0x78] sm:$0xff]  ;;  %v797_v39 = vld [vmem:[%s984_s5 + $0x70] sm:$0xff]  ;;  %486 = vmatpush.bf16.msra.mxu0 %v790_v36 }
  0x10   : > { %816 = vset.pattern.permute.xlu2 %v314_v2  ;;  %586 = vmatpush.bf16.msra.mxu1 %v798_v37  ;;  %v375_v42 = vpack.c.bf16 %v902_v23, %v902_v23  ;;  %v788_v45 = vld [vmem:[%s984_s5 + $0x28] sm:$0xff]  ;;  %v787_v47 = vld [vmem:[%s984_s5 + $0x20] sm:$0xff]  ;;  %v786_v49 = vld [vmem:[%s984_s5 + $0x18] sm:$0xff] }
  0x11   : > { %v310_v5 = vmax.f32 %v309_v4, 1.0  ;;  %v796_v46 = vld [vmem:[%s984_s5 + $0x68] sm:$0xff]  ;;  %v795_v48 = vld [vmem:[%s984_s5 + $0x60] sm:$0xff]  ;;  %v794_v50 = vld [vmem:[%s984_s5 + $0x58] sm:$0xff] }
  0x12   : > { %v785_v51 = vld [vmem:[%s984_s5 + $0x10] sm:$0xff]  ;;  %v784_v53 = vld [vmem:[%s984_s5 + $0x8] sm:$0xff]  ;;  %v783_v55 = vld [vmem:[%s984_s5] sm:$0xff] }
  0x13   : > { %819 = vrcp.f32 %v310_v5  ;;  %487 = vmatpush.bf16.msra.mxu0 %v789_v38  ;;  %v793_v52 = vld [vmem:[%s984_s5 + $0x50] sm:$0xff]  ;;  %v792_v54 = vld [vmem:[%s984_s5 + $0x48] sm:$0xff]  ;;  %v791_v56 = vld [vmem:[%s984_s5 + $0x40] sm:$0xff] }
  0x14   : > { %v339_v17 = vld.sshfl [vmem:[#allocation1] sm:$0xff pattern:$0x73625140]  ;;  %v340_v19 = vld.sshfl [vmem:[#allocation1 + $0x8] sm:$0xff pattern:$0x73625140]  ;;  %587 = vmatpush.bf16.msra.mxu1 %v797_v39 }
  0x15   : > { %v345_v18 = vsel %vm344_vm1, %v339_v17, 0  ;;  %v347_v20 = vsel %vm344_vm1, %v340_v19, 0  ;;  %378 = vst [vmem:[#allocation1] ss:$4 sm:$0xff] %v376_v22 }
  0x16   : > { %356 = vmatpush.bf16.msra.mxu2 %v345_v18  ;;  %369 = vmatpush.bf16.msra.mxu3 %v347_v20 }
  0x17   : > { %814 = vset.pattern.permute.xlu0 %v314_v2  ;;  %488 = vmatpush.bf16.msra.mxu0 %v788_v45 }
  0x18   : > { %588 = vmatpush.bf16.msra.mxu1 %v796_v46 }
  0x19   : > { %v820_v6 = vpop.eup %819 }
  0x1a   : > { %330 = vperm.xlu1 %815, %v820_v6   ;;  %v817_v6 = vld [vmem:[%s985_s6] ss:$0 sm:$0xff] }
  0x1b   : > { %489 = vmatpush.bf16.msra.mxu0 %v787_v47 }
  0x1c   : > { %v379_v40 = vld.sshfl [vmem:[#allocation1] sm:$0xff pattern:$0x73625140]  ;;  %v380_v41 = vld.sshfl [vmem:[#allocation1 + $0x8] sm:$0xff pattern:$0x73625140]  ;;  %589 = vmatpush.bf16.msra.mxu1 %v795_v48 }
  0x1d   : > { %v384_v43 = vsel %vm344_vm1, %v379_v40, 0  ;;  %v386_v44 = vsel %vm344_vm1, %v380_v41, 0 }
  0x1e   : > { %395 = vmatpush.bf16.msrb.mxu2 %v384_v43  ;;  %408 = vmatpush.bf16.msrb.mxu3 %v386_v44 }
  0x1f   : > { %490 = vmatpush.bf16.msra.mxu0 %v786_v49 }
  0x20   : > { %590 = vmatpush.bf16.msra.mxu1 %v794_v50 }
  0x22   : > { %303 = vperm.xlu1 %815, %v694_v7  }
  0x23   : > { %491 = vmatpush.bf16.msra.mxu0 %v785_v51 }
  0x24   : > { %591 = vmatpush.bf16.msra.mxu1 %v793_v52 }
  0x27   : > { %492 = vmatpush.bf16.msra.mxu0 %v784_v53 }
  0x28   : > { %592 = vmatpush.bf16.msra.mxu1 %v792_v54 }
  0x2b   : > { %493 = vmatpush.bf16.msra.mxu0 %v783_v55 }
  0x2c   : > { %593 = vmatpush.bf16.msra.mxu1 %v791_v56 }
  0x81   : > { %v296_v9 = vpop.permute.xlu0 %295 }
  0x82   : > { %v297_v10 = vperm.slane %v296_v9, 0  ;;  %v312_v9 = vrot.slane %v902_v23, 1 }
  0x84   : > { %vm298_vm0 = vcmp.lt.s32.totalorder %v293_v8, %v297_v10 }
  0x85   : > { %v693_v12 = vsel %vm298_vm0, 1.0, %v830_v11 }
  0x86   : > { %317 = vperm.xlu0 %814, %v693_v12  }
  0x8c   : > { %v331_v13 = vpop.permute.xlu1 %330 }
  0x8d   : > { %v333_v32 = vperm.slane %v331_v13, 0 }
  0x94   : > { %v304_v15 = vpop.permute.xlu1 %303 }
  0x95   : > { %v305_v16 = vperm.slane %v304_v15, 0 }
  0x97   : > { %vm306_vm2 = vcmp.lt.s32.totalorder %v293_v8, %v305_v16  ;;  %v818_v8 = vld [vmem:[%s985_s6 + $0x1] ss:$0 sm:$0xff] }
  0x98   : > { %v695_v21 = vsel %vm306_vm2, 1.0, %v830_v11 }
  0x99   : > { %418 = vperm.xlu2 %816, %v695_v21  }
  0xf3   : > { %v419_v20 = vpop.permute.xlu2 %418 }
  0xf8   : > { %v318_v24 = vpop.permute.xlu0 %317 }
  0xf9   : > { %v319_v25 = vmul.f32 %v318_v24, %v902_v23 }
  0xfb   : > { %v321_v26 = vsel %vm320_vm3, %v319_v25, 0.0 }
  0xfc   : > { %v322_v27 = vrot.slane %v321_v26, 4 }
  0xfe   : > { %v323_v28 = vadd.f32 %v322_v27, %v321_v26 }
 0x100   : > { %v324_v29 = vrot.slane %v323_v28, 2 }
 0x102   : > { %v325_v30 = vadd.f32 %v324_v29, %v323_v28 }
 0x104   : > { %v326_v31 = vrot.slane %v325_v30, 1 }
 0x106   : > { %v327_v33 = vadd.f32 %v326_v31, %v325_v30 }
 0x108   : > { %v334_v34 = vmul.f32 %v333_v32, %v327_v33 }
 0x10a   : > { %v335_v35 = vpack.c.bf16 %v334_v34, %v334_v34 }
 0x10c   : > { %696 = vmatmul.msk.bf16.vlgmr.msra.gmra.mxu2 %vm320_vm3, %v335_v35  ;;  %697 = vmatmul.msk.bf16.vlgmr.msra.gmra.mxu3 %vm320_vm3, %v335_v35 }
 0x11c   : > { %698 = vmatmul.msk.bf16.vlgmr.msrb.gmra.mxu2 %vm320_vm3, %v375_v42  ;;  %699 = vmatmul.msk.bf16.vlgmr.msrb.gmra.mxu3 %vm320_vm3, %v375_v42 }
 0x18f   : > { %v358_v57 = vpop.f32.mrf.mxu2  ;;  %v371_v58 = vpop.f32.mrf.mxu3 }
 0x190   : > { %v421_v59 = vpack.c.bf16 %v358_v57, %v358_v57  ;;  %v520_v60 = vpack.c.bf16 %v371_v58, %v371_v58 }
 0x192   : > { %494 = vmatmul.bf16.vlgmr.msra.gmra.mxu0 %v421_v59  ;;  %594 = vmatmul.bf16.vlgmr.msra.gmra.mxu1 %v520_v60 }
 0x197   : > { %v360_v61 = vpop.f32.mrf.mxu2  ;;  %v373_v62 = vpop.f32.mrf.mxu3 }
 0x19f   : > { %v397_v63 = vpop.f32.mrf.mxu2  ;;  %v410_v0 = vpop.f32.mrf.mxu3 }
 0x1a7   : > { %v399_v1 = vpop.f32.mrf.mxu2  ;;  %v412_v2 = vpop.f32.mrf.mxu3 }
 0x20f   : > { %v495_v3 = vpop.f32.mrf.mxu0  ;;  %v595_v4 = vpop.f32.mrf.mxu1 }
 0x210   : > { %v499_v5 = vperm.slane %v495_v3, 0  ;;  %v599_v7 = vperm.slane %v595_v4, 0 }
 0x212   : > { %v500_v10 = vadd.f32 %v499_v5, %v397_v63  ;;  %v600_v11 = vadd.f32 %v599_v7, %v410_v0 }
 0x214   : > { %v505_v12 = vadd.f32 %v817_v6, %v500_v10  ;;  %v606_v13 = vadd.f32 %v818_v8, %v600_v11 }
 0x216   : > { %v607_v14 = vsub.f32 %v606_v13, %v312_v9  ;;  %v506_v15 = vsub.f32 %v505_v12, %v312_v9 }
 0x217   : > { %v497_v16 = vpop.f32.mrf.mxu0  ;;  %v597_v17 = vpop.f32.mrf.mxu1 }
 0x218   : > { %v608_v18 = vmul.f32 %v607_v14, %v607_v14  ;;  %v507_v19 = vmul.f32 %v506_v15, %v506_v15 }
 0x21a   : > { %v609_v21 = vmul.f32 %v608_v18, %v419_v20  ;;  %v508_v22 = vmul.f32 %v507_v19, %v419_v20 }
 0x21c   : > { %v610_v24 = vsel %vm320_vm3, %v609_v21, 0.0  ;;  %v509_v25 = vsel %vm320_vm3, %v508_v22, 0.0 }
 0x21d   : > { %611 = vadd.xlane.f32.xlu1 %v610_v24  ;;  %510 = vadd.xlane.f32.xlu2 %v509_v25 }
 0x290   : > { %v612_v23 = vpop.xlane.xlu1 %611  ;;  %v511_v26 = vpop.xlane.xlu2 %510 }
 0x291   : > { %v613_v27 = vrot.slane %v612_v23, 4  ;;  %v512_v28 = vrot.slane %v511_v26, 4 }
 0x293   : > { %v614_v29 = vadd.f32 %v613_v27, %v612_v23  ;;  %v513_v30 = vadd.f32 %v512_v28, %v511_v26 }
 0x295   : > { %v615_v31 = vrot.slane %v614_v29, 2  ;;  %v514_v32 = vrot.slane %v513_v30, 2 }
 0x297   : > { %v616_v33 = vadd.f32 %v615_v31, %v614_v29  ;;  %v515_v34 = vadd.f32 %v514_v32, %v513_v30 }
 0x299   : > { %v516_v35 = vrot.slane %v515_v34, 1  ;;  %v617_v36 = vrot.slane %v616_v33, 1 }
 0x29b   : > { %v517_v37 = vadd.f32 %v516_v35, %v515_v34  ;;  %v618_v38 = vadd.f32 %v617_v36, %v616_v33 }
 0x29d   : > { %799 = vpush %v517_v37 }
 0x29e   : > { %801 = vpush %v618_v38 }
 0x2ce   : > { %s800_s9 = spop %799 }
 0x2cf   : > { %s802_s10 = spop %801 }
 0x2d0   : > { %s620_s12 = sadd.f32 %s802_s10, %s800_s9 }
 0x2d2   : > { %s621_s16 = smul.f32 %s620_s12, %s420_s8 }
 0x2d4   : > { %v622_v39 = vstv %s621_s16 }
 0x2d5   : > { %623 = vst [vmem:[%s288_s15] sm:$0xff] %v622_v39 }
 0x2d6 PF: > { %s18_s26 = sadd.s32 1, %s827_s26  }
 0x2d7   : > { %p15_p4 = scmp.ge.s32.totalorder %s18_s26, 4  }
 0x2d9   :  { %17 = sbr.rel (!%p15_p4) target bundleno = 2 (0x2), region = 83 }

</bundles_post_ra>
